<compile_context>
chip_gen: v7x
topology: tpu7x:2x2x1
jax: 0.10.0
libtpu: 0.0.40
codegen_flags: <defaults>
</compile_context>

<pallas_src>
from functools import partial

import jax
import jax.numpy as jnp
from jax.experimental import pallas as pl
from jax.experimental.pallas import tpu as pltpu

N_STATES = 48
N_HIDDEN = 50
N_ACTIONS = 48          # assumed: 12 tasks * 4 servers (env.action_space not given)

H_PAD = 128             # hidden 50 -> 128 lanes (zero padded, lane-dense matmul 1)
_TB_MAX = 4096          # batch tile (rows), multiple of 8
_MIN_GRID = 2           # keep >= 2 grid steps for the v7x 2-TC megacore split


def _round_up(n, m):
    return ((n + m - 1) // m) * m


def _pick_tile(b):
    """Batch tile (multiple of 8) and grid length for a batch of b (>= 8) rows."""
    if b <= 8:
        return 8, 1
    tb = min(_TB_MAX, _round_up(pl.cdiv(b, _MIN_GRID), 8))
    return tb, pl.cdiv(b, tb)


def prepare_params(w1, b1, w2, b2, compute_dtype=jnp.float32):
    """Pad/cast params ONCE into their kernel layout (call outside the hot loop).

    w1: (N_STATES, N_HIDDEN)  -> (N_STATES, H_PAD)   compute_dtype
    b1: (1, N_HIDDEN)         -> (1, H_PAD)          f32
    w2: (N_HIDDEN, N_ACTIONS) -> (H_PAD, N_ACTIONS)  compute_dtype
    b2: (1, N_ACTIONS)        -> (1, N_ACTIONS)      f32
    compute_dtype=jnp.bfloat16 halves weight/x DMA bytes; valid on v5e/v6e/v7x
    (MXU accumulates in f32; bias + ReLU stay f32)."""
    w1p = jnp.zeros((N_STATES, H_PAD), compute_dtype)
    w1p = w1p.at[:, :N_HIDDEN].set(w1.astype(compute_dtype))
    b1p = jnp.zeros((1, H_PAD), jnp.float32)
    b1p = b1p.at[:, :N_HIDDEN].set(jnp.asarray(b1, jnp.float32).reshape(1, -1))
    w2p = jnp.zeros((H_PAD, N_ACTIONS), compute_dtype)
    w2p = w2p.at[:N_HIDDEN, :].set(w2.astype(compute_dtype))
    b2p = jnp.asarray(b2, jnp.float32).reshape(1, N_ACTIONS)
    return w1p, b1p, w2p, b2p


def _net_kernel(x_ref, w1_ref, b1_ref, w2_ref, b2_ref, o_ref):
    # fc1: (tb, 48) @ (48, 128) -> f32 accumulate; bias + ReLU in f32.
    h = jnp.dot(x_ref[...], w1_ref[...], preferred_element_type=jnp.float32)
    h = jnp.maximum(h + b1_ref[...], 0.0)
    # out: (tb, 128) @ (128, N_ACTIONS) -> f32 accumulate; bias in f32.
    q = jnp.dot(h.astype(w2_ref.dtype), w2_ref[...],
                preferred_element_type=jnp.float32)
    o_ref[...] = (q + b2_ref[...]).astype(o_ref.dtype)


def _argmax_kernel(x_ref, w1_ref, b1_ref, w2_ref, b2_ref, a_ref):
    # Fused forward + argmax for the batch=1 choose_action path.
    h = jnp.dot(x_ref[...], w1_ref[...], preferred_element_type=jnp.float32)
    h = jnp.maximum(h + b1_ref[...], 0.0)
    q = jnp.dot(h.astype(w2_ref.dtype), w2_ref[...],
                preferred_element_type=jnp.float32) + b2_ref[...]   # (1, N_ACTIONS)
    lane = jax.lax.broadcasted_iota(jnp.int32, q.shape, 1)
    m = jnp.max(q, axis=1, keepdims=True)
    # first index attaining the max (matches torch.max(...)[1] semantics)
    a_ref[...] = jnp.min(jnp.where(q >= m, lane, N_ACTIONS), axis=1, keepdims=True)


@partial(jax.jit, static_argnames=("out_dtype",))
def net_forward(x, w1p, b1p, w2p, b2p, out_dtype=jnp.float32):
    """x: (B, N_STATES); padded params from prepare_params(); -> (B, N_ACTIONS).

    out_dtype=jnp.bfloat16 halves output writeback (fine for argmax/TD use)."""
    B = x.shape[0]
    if x.dtype != w1p.dtype:
        x = x.astype(w1p.dtype)     # caller can pass bf16 x to avoid this pass

    # Only pad tiny batches up to one 8-row sublane tile; large batches are
    # gridded directly over the unpadded array (edge block masked by Pallas).
    if B < 8:
        xb = jnp.pad(x, ((0, 8 - B), (0, 0)))
    else:
        xb = x
    Bp = xb.shape[0]
    tb, grid_b = _pick_tile(Bp)

    out = pl.pallas_call(
        _net_kernel,
        out_shape=jax.ShapeDtypeStruct((Bp, N_ACTIONS), out_dtype),
        grid=(grid_b,),
        in_specs=[
            pl.BlockSpec((tb, N_STATES), lambda i: (i, 0)),      # x: tiled over batch
            pl.BlockSpec((N_STATES, H_PAD), lambda i: (0, 0)),   # W1: VMEM-resident
            pl.BlockSpec((1, H_PAD), lambda i: (0, 0)),          # b1: resident
            pl.BlockSpec((H_PAD, N_ACTIONS), lambda i: (0, 0)),  # W2: resident
            pl.BlockSpec((1, N_ACTIONS), lambda i: (0, 0)),      # b2: resident
        ],
        out_specs=pl.BlockSpec((tb, N_ACTIONS), lambda i: (i, 0)),
        compiler_params=pltpu.CompilerParams(
            dimension_semantics=("parallel",),   # megacore split on v7x
        ),
    )(xb, w1p, b1p, w2p, b2p)

    return out if Bp == B else out[:B]


@jax.jit
def net_argmax(x, w1p, b1p, w2p, b2p):
    """Fused choose_action: x (1, N_STATES) -> int32 action index (scalar array)."""
    if x.dtype != w1p.dtype:
        x = x.astype(w1p.dtype)
    idx = pl.pallas_call(
        _argmax_kernel,
        out_shape=jax.ShapeDtypeStruct((1, 1), jnp.int32),
    )(x, w1p, b1p, w2p, b2p)
    return idx[0, 0]


def init_params(key):
    """Mirror the PyTorch module: weights ~ Normal(0, 0.1); biases keep
    nn.Linear's default Uniform(-1/sqrt(fan_in), 1/sqrt(fan_in)).
    Weights stored as (in, out)."""
    k1, k2, k3, k4 = jax.random.split(key, 4)
    w1 = 0.1 * jax.random.normal(k1, (N_STATES, N_HIDDEN), jnp.float32)
    bound1 = 1.0 / (N_STATES ** 0.5)
    b1 = jax.random.uniform(k2, (1, N_HIDDEN), jnp.float32, -bound1, bound1)
    w2 = 0.1 * jax.random.normal(k3, (N_HIDDEN, N_ACTIONS), jnp.float32)
    bound2 = 1.0 / (N_HIDDEN ** 0.5)
    b2 = jax.random.uniform(k4, (1, N_ACTIONS), jnp.float32, -bound2, bound2)
    return w1, b1, w2, b2


def _ref_forward(x, w1, b1, w2, b2):
    return jnp.maximum(x @ w1 + b1, 0.0) @ w2 + b2


if __name__ == "__main__":
    key = jax.random.PRNGKey(0)
    kx, kb, kp = jax.random.split(key, 3)
    w1, b1, w2, b2 = init_params(kp)

    # Canonical padded parameters: pad/cast ONCE, reuse for every forward.
    p32 = prepare_params(w1, b1, w2, b2, jnp.float32)

    # 1) Small action-selection-sized batch, f32 path.
    x_small = jax.random.normal(kx, (2, N_STATES), jnp.float32)
    out_small = net_forward(x_small, *p32)
    jax.block_until_ready(out_small)
    ref_small = _ref_forward(x_small, w1, b1, w2, b2)
    assert out_small.shape == (2, N_ACTIONS)
    assert jnp.allclose(out_small, ref_small, atol=1e-4, rtol=1e-4)

    # 2) learn()-sized batch that does not divide the tile (grid edge block,
    #    no wrapper-side pad/slice of x or the output).
    x_big = jax.random.normal(kb, (1000, N_STATES), jnp.float32)
    out_big = net_forward(x_big, *p32)
    jax.block_until_ready(out_big)
    ref_big = _ref_forward(x_big, w1, b1, w2, b2)
    assert out_big.shape == (1000, N_ACTIONS)
    assert jnp.allclose(out_big, ref_big, atol=1e-4, rtol=1e-4)

    # 3) bf16 compute path (valid on v5e/v6e/v7x); looser tolerance.
    pbf = prepare_params(w1, b1, w2, b2, jnp.bfloat16)
    out_bf = net_forward(x_big, *pbf)
    jax.block_until_ready(out_bf)
    assert jnp.allclose(out_bf, ref_big, atol=3e-2, rtol=3e-2)

    # 4) Fused argmax for the batch=1 choose_action path.
    x1 = x_small[:1]
    act = net_argmax(x1, *p32)
    jax.block_until_ready(act)
    a = int(act)
    assert 0 <= a < N_ACTIONS
    assert float(ref_small[0, a]) >= float(ref_small[0].max()) - 1e-4

    print("KERNEL_OK")
</pallas_src>

<mosaic_0001>
module attributes {stable_mosaic.version = 11 : i64} {
  func.func @_net_kernel(%arg0: i32, %arg1: memref<8x48xf32, #tpu.memory_space<vmem>>, %arg2: memref<48x128xf32, #tpu.memory_space<vmem>>, %arg3: memref<1x128xf32, #tpu.memory_space<vmem>>, %arg4: memref<128x48xf32, #tpu.memory_space<vmem>>, %arg5: memref<1x48xf32, #tpu.memory_space<vmem>>, %arg6: memref<8x48xf32, #tpu.memory_space<vmem>>) attributes {dimension_semantics = [#tpu.dimension_semantics<parallel>], iteration_bounds = array<i64: 1>, scalar_prefetch = 0 : i64, scratch_operands = 0 : i64, tpu.core_type = #tpu.core_type<tc>, window_params = [{transform_indices = @transform_0, window_bounds = array<i64: 8, 48>}, {pipeline_mode = #tpu.pipeline_mode<synchronous>, transform_indices = @transform_1, window_bounds = array<i64: 48, 128>}, {pipeline_mode = #tpu.pipeline_mode<synchronous>, transform_indices = @transform_2, window_bounds = array<i64: 1, 128>}, {pipeline_mode = #tpu.pipeline_mode<synchronous>, transform_indices = @transform_3, window_bounds = array<i64: 128, 48>}, {pipeline_mode = #tpu.pipeline_mode<synchronous>, transform_indices = @transform_4, window_bounds = array<i64: 1, 48>}, {transform_indices = @transform_5, window_bounds = array<i64: 8, 48>}]} {
    %c0 = arith.constant 0 : index
    %c0_0 = arith.constant 0 : index
    %0 = vector.load %arg1[%c0, %c0_0] : memref<8x48xf32, #tpu.memory_space<vmem>>, vector<8x48xf32>
    %c0_1 = arith.constant 0 : index
    %c0_2 = arith.constant 0 : index
    %1 = vector.load %arg2[%c0_1, %c0_2] : memref<48x128xf32, #tpu.memory_space<vmem>>, vector<48x128xf32>
    %cst = arith.constant dense<0.000000e+00> : vector<8x128xf32>
    %2 = tpu.matmul %0, %1, %cst {dimension_numbers = #tpu.dot_dimension_numbers<[1], [0], [0], [1], [0, 0, 1, 1], [], []>} : vector<8x48xf32>, vector<48x128xf32>, vector<8x128xf32> -> vector<8x128xf32>
    %c0_3 = arith.constant 0 : index
    %c0_4 = arith.constant 0 : index
    %3 = vector.load %arg3[%c0_3, %c0_4] : memref<1x128xf32, #tpu.memory_space<vmem>>, vector<1x128xf32>
    %4 = vector.broadcast %3 : vector<1x128xf32> to vector<8x128xf32>
    %5 = arith.addf %2, %4 : vector<8x128xf32>
    %cst_5 = arith.constant 0.000000e+00 : f32
    %6 = vector.broadcast %cst_5 : f32 to vector<8x128xf32>
    %7 = arith.maximumf %5, %6 : vector<8x128xf32>
    %c0_6 = arith.constant 0 : index
    %c0_7 = arith.constant 0 : index
    %8 = vector.load %arg4[%c0_6, %c0_7] : memref<128x48xf32, #tpu.memory_space<vmem>>, vector<128x48xf32>
    %cst_8 = arith.constant dense<0.000000e+00> : vector<8x48xf32>
    %9 = tpu.matmul %7, %8, %cst_8 {dimension_numbers = #tpu.dot_dimension_numbers<[1], [0], [0], [1], [0, 0, 1, 1], [], []>} : vector<8x128xf32>, vector<128x48xf32>, vector<8x48xf32> -> vector<8x48xf32>
    %c0_9 = arith.constant 0 : index
    %c0_10 = arith.constant 0 : index
    %10 = vector.load %arg5[%c0_9, %c0_10] : memref<1x48xf32, #tpu.memory_space<vmem>>, vector<1x48xf32>
    %11 = vector.broadcast %10 : vector<1x48xf32> to vector<8x48xf32>
    %12 = arith.addf %9, %11 : vector<8x48xf32>
    %c0_11 = arith.constant 0 : index
    %c0_12 = arith.constant 0 : index
    %13 = vector.load %arg6[%c0_11, %c0_12] : memref<8x48xf32, #tpu.memory_space<vmem>>, vector<8x48xf32>
    tpu.vector_store %arg6[%c0_11, %c0_12], %12 {strides = array<i32>} : memref<8x48xf32, #tpu.memory_space<vmem>>, vector<8x48xf32>,
    return
  }
  func.func @transform_0(%arg0: i32) -> (i32, i32) {
    %c0_i32 = arith.constant 0 : i32
    %c0_i32_0 = arith.constant 0 : i32
    return %arg0, %c0_i32 : i32, i32
  }
  func.func @transform_1(%arg0: i32) -> (i32, i32) {
    %c0_i32 = arith.constant 0 : i32
    %c0_i32_0 = arith.constant 0 : i32
    %c0_i32_1 = arith.constant 0 : i32
    return %c0_i32, %c0_i32_0 : i32, i32
  }
  func.func @transform_2(%arg0: i32) -> (i32, i32) {
    %c0_i32 = arith.constant 0 : i32
    %c0_i32_0 = arith.constant 0 : i32
    %c0_i32_1 = arith.constant 0 : i32
    return %c0_i32, %c0_i32_0 : i32, i32
  }
  func.func @transform_3(%arg0: i32) -> (i32, i32) {
    %c0_i32 = arith.constant 0 : i32
    %c0_i32_0 = arith.constant 0 : i32
    %c0_i32_1 = arith.constant 0 : i32
    return %c0_i32, %c0_i32_0 : i32, i32
  }
  func.func @transform_4(%arg0: i32) -> (i32, i32) {
    %c0_i32 = arith.constant 0 : i32
    %c0_i32_0 = arith.constant 0 : i32
    %c0_i32_1 = arith.constant 0 : i32
    return %c0_i32, %c0_i32_0 : i32, i32
  }
  func.func @transform_5(%arg0: i32) -> (i32, i32) {
    %c0_i32 = arith.constant 0 : i32
    %c0_i32_0 = arith.constant 0 : i32
    return %arg0, %c0_i32 : i32, i32
  }
}

</mosaic_0001>

<bundles_post_ra>
// kernel: net_forward.1
= control target key start
LH: loop header
LB: loop body
LE: loop exit
PB: predicated region body
PF: predicated region fallthrough
CT: control target
= control target key end

     0   :  { %v320_v0 = vmov 0.0|0.0   ;;  %vm321_vm0 = vmmov 0   ;;  %v322_v4 = vmov 0.0   ;;  %vm34_vm1 = vcmask 392192   ;;  %s433_s1 = inlined_call_operand.vmem [shape: f32[48,128], index: 1, kind: input, shape index: {}]   ;;  %s434_s3 = inlined_call_operand.vmem [shape: f32[128,48], index: 3, kind: input, shape index: {}]   ;;  %s435_s0 = inlined_call_operand.vmem [shape: f32[8,48], index: 0, kind: input, shape index: {}]   ;;  %s436_s2 = inlined_call_operand.vmem [shape: f32[1,128], index: 2, kind: input, shape index: {}]   ;;  %s437_s4 = inlined_call_operand.vmem [shape: f32[1,48], index: 4, kind: input, shape index: {}]   ;;  %s438_s5 = inlined_call_operand.vmem [shape: f32[8,48], index: 5, kind: output, shape index: {}]  }
   0x1   :  { %284 = vmatprep.subr.bf16.mxu0 %v320_v0  ;;  %v21_v1 = vld [vmem:[%s433_s1] sm:$0xff]  ;;  %v22_v2 = vld [vmem:[%s433_s1 + $0x8] sm:$0xff]  ;;  %v23_v3 = vld [vmem:[%s433_s1 + $0x10] sm:$0xff]  ;;  %246 = vmatprep.mubr.msk.f32.mxu0 %vm321_vm0, %v322_v4 }
   0x2   :  { %v285_v5 = vpack.c.bf16 %v22_v2, %v21_v1  ;;  %v24_v6 = vld [vmem:[%s433_s1 + $0x18] sm:$0xff]  ;;  %293 = vmatprep.subr.bf16.mxu1 %v320_v0  ;;  %281 = vmatprep.mubr.msk.f32.mxu1 %vm321_vm0, %v322_v4  ;;  %v109_v7 = vld [vmem:[%s434_s3] sm:$0xff]  ;;  %v110_v8 = vld [vmem:[%s434_s3 + $0x8] sm:$0xff] }
   0x3   :  { %v288_v9 = vpack.c.bf16 %v24_v6, %v23_v3  ;;  %v294_v10 = vpack.c.bf16 %v110_v8, %v109_v7  ;;  %v111_v11 = vld [vmem:[%s434_s3 + $0x10] sm:$0xff]  ;;  %v112_v12 = vld [vmem:[%s434_s3 + $0x18] sm:$0xff]  ;;  %v25_v13 = vld [vmem:[%s433_s1 + $0x20] sm:$0xff] }
   0x4   :  { %286 = vmatpush3.bf16.msra.mxu0 %v285_v5  ;;  %v26_v14 = vld [vmem:[%s433_s1 + $0x28] sm:$0xff]  ;;  %v297_v15 = vpack.c.bf16 %v112_v12, %v111_v11  ;;  %v113_v16 = vld [vmem:[%s434_s3 + $0x20] sm:$0xff]  ;;  %v115_v20 = vld [vmem:[%s434_s3 + $0x30] sm:$0xff] }
   0x5   :  { %287 = vmatprep.subr.bf16.mxu0 %v320_v0  ;;  %295 = vmatpush3.bf16.msra.mxu1 %v294_v10  ;;  %v114_v17 = vld [vmem:[%s434_s3 + $0x28] sm:$0xff]  ;;  %v291_v18 = vpack.c.bf16 %v26_v14, %v25_v13  ;;  %v116_v21 = vld [vmem:[%s434_s3 + $0x38] sm:$0xff]  ;;  %v20_v22 = vld [vmem:[%s435_s0] sm:$0xff] }
   0x6   :  { %296 = vmatprep.subr.bf16.mxu1 %v320_v0  ;;  %v300_v19 = vpack.c.bf16 %v114_v17, %v113_v16  ;;  %v303_v23 = vpack.c.bf16 %v116_v21, %v115_v20  ;;  %v117_v24 = vld [vmem:[%s434_s3 + $0x40] sm:$0xff]  ;;  %v118_v25 = vld [vmem:[%s434_s3 + $0x48] sm:$0xff]  ;;  %v119_v27 = vld [vmem:[%s434_s3 + $0x50] sm:$0xff] }
   0x7   :  { %v306_v26 = vpack.c.bf16 %v118_v25, %v117_v24  ;;  %v120_v28 = vld [vmem:[%s434_s3 + $0x58] sm:$0xff]  ;;  %v121_v30 = vld [vmem:[%s434_s3 + $0x60] sm:$0xff]  ;;  %v122_v31 = vld [vmem:[%s434_s3 + $0x68] sm:$0xff] }
   0x8   :  { %289 = vmatpush3.bf16.msra.mxu0 %v288_v9  ;;  %v309_v29 = vpack.c.bf16 %v120_v28, %v119_v27  ;;  %v312_v32 = vpack.c.bf16 %v122_v31, %v121_v30  ;;  %v123_v33 = vld [vmem:[%s434_s3 + $0x70] sm:$0xff]  ;;  %v124_v34 = vld [vmem:[%s434_s3 + $0x78] sm:$0xff]  ;;  %v207_v36 = vld [vmem:[%s436_s2] ss:$0 sm:$0xff] }
   0x9   :  { %290 = vmatprep.subr.bf16.mxu0 %v320_v0  ;;  %298 = vmatpush3.bf16.msra.mxu1 %v297_v15  ;;  %v315_v35 = vpack.c.bf16 %v124_v34, %v123_v33  ;;  %v209_v41 = vld [vmem:[%s437_s4] ss:$0 sm:$0xff] }
   0xa   :  { %299 = vmatprep.subr.bf16.mxu1 %v320_v0 }
   0xc   :  { %292 = vmatpush3.bf16.msra.mxu0 %v291_v18 }
   0xd   :  { %301 = vmatpush3.bf16.msra.mxu1 %v300_v19 }
   0xe   :  { %302 = vmatprep.subr.bf16.mxu1 %v320_v0 }
   0xf   :  { %247 = vmatmul.mubr.msk.f32.vlgmr.msra.gmra.mrb[0].mxu0 %vm34_vm1, %v20_v22 }
  0x11   :  { %304 = vmatpush3.bf16.msra.mxu1 %v303_v23 }
  0x12   :  { %305 = vmatprep.subr.bf16.mxu1 %v320_v0 }
  0x15   :  { %307 = vmatpush3.bf16.msra.mxu1 %v306_v26 }
  0x16   :  { %308 = vmatprep.subr.bf16.mxu1 %v320_v0 }
  0x19   :  { %310 = vmatpush3.bf16.msra.mxu1 %v309_v29 }
  0x1a   :  { %311 = vmatprep.subr.bf16.mxu1 %v320_v0 }
  0x1d   :  { %313 = vmatpush3.bf16.msra.mxu1 %v312_v32 }
  0x1e   :  { %314 = vmatprep.subr.bf16.mxu1 %v320_v0 }
  0x21   :  { %316 = vmatpush3.bf16.msra.mxu1 %v315_v35 }
  0xe2   :  { %v104_v37 = vpop.f32.mrb[0].mxu0 }
  0xe3   :  { %v105_v38 = vadd.f32 %v207_v36, %v104_v37  ;;  %v248_v39 = vpop.f32.mrb[1].mxu0 }
  0xe5   :  { %v108_v40 = vmax.f32 %v105_v38, 0.0 }
  0xe7   :  { %282 = vmatmul.mubr.f32.vlgmr.msra.gmra.mrb[0].mxu1 %v108_v40 }
 0x1ba   :  { %v198_v42 = vpop.f32.mrb[0].mxu1 }
 0x1bb   :  { %v199_v43 = vadd.f32 %v209_v41, %v198_v42  ;;  %v283_v44 = vpop.f32.mrb[1].mxu1 }
 0x1bd   :  { %202 = vst.msk [vmem:[%s438_s5] sm:$0xff] %vm34_vm1, %v199_v43 }

</bundles_post_ra>
